<compile_context>
chip_gen: v6e
topology: v6e:2x2x1
jax: 0.10.0
libtpu: 0.0.40
codegen_flags: <defaults>
</compile_context>

<pallas_src>
import jax
import jax.numpy as jnp
from jax.experimental import pallas as pl
from jax.experimental.pallas import tpu as pltpu


def net2_kernel(x_ref, w1_ref, b1_ref, w2_ref, b2_ref, w3_ref, b3_ref, o_ref):
    # Cast x to bf16 in-kernel (hides under DMA); MXU matmul with f32 accumulation.
    x = x_ref[...].astype(jnp.bfloat16)                          # (TB, input_dim)
    h1 = jnp.dot(x, w1_ref[...], preferred_element_type=jnp.float32)
    h1 = jnp.maximum(h1 + b1_ref[...], 0.0)                      # f32, (TB, n1)
    # (dropout = identity, eval mode)
    h2 = jnp.dot(h1.astype(jnp.bfloat16), w2_ref[...],
                 preferred_element_type=jnp.float32)
    h2 = jnp.maximum(h2 + b2_ref[...], 0.0)                      # f32, (TB, n2)
    # fc3 (out_features == 1): VPU multiply + lane reduction — avoids an MXU pass
    # that would use only one output column.
    out = jnp.sum(h2 * w3_ref[...], axis=-1)                     # (TB,)
    # Lane-dense store: batch lives on the lane axis of the output slab.
    o_ref[...] = (out[None, None, :] + b3_ref[...]).astype(o_ref.dtype)


def _round_up(n, m):
    return ((n + m - 1) // m) * m


def _vmem_limit_bytes(tb, input_dim, n1, n2):
    # Rough footprint: double-buffered x tile + out slab + weights + f32 intermediates.
    db = 2
    est = (db * tb * input_dim * 4                       # f32 x tile
           + db * tb * 4                                 # f32 out slab
           + db * (input_dim * n1 + n1 * n2) * 2         # bf16 weights
           + db * (n1 + 2 * n2 + 1) * 4                  # biases + w3 row (f32)
           + tb * (n1 + n2) * 4)                         # f32 h1/h2 intermediates
    # Floor 32 MiB (> v5e's 16 MiB default), cap 48 MiB (< v7x's 64 MiB physical).
    return int(max(32 * 1024 * 1024, min(48 * 1024 * 1024, 4 * est)))


def prepare_params(params):
    """One-time conversion of f32 params into the kernel's layout/dtypes.

    w1/w2 -> bf16 (MXU-native), w3 -> f32 (1, n2) row for the VPU multiply,
    biases stay f32.  Do this once, outside the serving loop.
    """
    return {
        "w1": params["w1"].astype(jnp.bfloat16),
        "b1": params["b1"].reshape(1, -1),
        "w2": params["w2"].astype(jnp.bfloat16),
        "b2": params["b2"].reshape(1, -1),
        "w3": params["w3"].reshape(1, -1),
        "b3": params["b3"].reshape(1, 1),
    }


def net2_forward(x, prepared, *, block_b=1024):
    """x: (B, input_dim) float32. Returns (B, 1) float32 (eval-mode forward)."""
    B, input_dim = x.shape
    n1 = prepared["w1"].shape[1]
    n2 = prepared["w2"].shape[1]

    # Batch tile: clamp to the (128-rounded) batch, default up to block_b.
    tb = max(128, min(block_b, _round_up(B, 128)))
    # If one tile would cover the whole batch, split it so the "parallel" grid axis
    # can actually shard across v7x's two TensorCores (keep tb a multiple of 128).
    if pl.cdiv(B, tb) == 1 and tb >= 256 and tb % 256 == 0:
        tb //= 2
    num_tiles = pl.cdiv(B, tb)

    # No full-array pad in the common case: Pallas masks the ragged last block and
    # padded rows are row-independent garbage that we slice off below.  Only pad when
    # the batch is smaller than a single tile (cost < tb rows, negligible).
    if B < tb:
        x = jnp.pad(x, ((0, tb - B), (0, 0)))

    def resident(shape):
        # Constant block index -> fetched once, stays VMEM-resident across grid steps.
        ndim = len(shape)
        return pl.BlockSpec(shape, lambda i, _n=ndim: (0,) * _n)

    out = pl.pallas_call(
        net2_kernel,
        out_shape=jax.ShapeDtypeStruct((num_tiles, 1, tb), jnp.float32),
        grid_spec=pl.GridSpec(
            grid=(num_tiles,),
            in_specs=[
                pl.BlockSpec((tb, input_dim), lambda i: (i, 0)),  # x tile (pipelined)
                resident((input_dim, n1)),                        # w1 (bf16)
                resident((1, n1)),                                # b1
                resident((n1, n2)),                               # w2 (bf16)
                resident((1, n2)),                                # b2
                resident((1, n2)),                                # w3 row
                resident((1, 1)),                                 # b3
            ],
            out_specs=pl.BlockSpec((1, 1, tb), lambda i: (i, 0, 0)),  # lane-dense
        ),
        compiler_params=pltpu.CompilerParams(
            dimension_semantics=("parallel",),                      # megacore split (v7x)
            vmem_limit_bytes=_vmem_limit_bytes(tb, input_dim, n1, n2),
        ),
    )(x, prepared["w1"], prepared["b1"], prepared["w2"], prepared["b2"],
      prepared["w3"], prepared["b3"])

    # (num_tiles, 1, TB) lane-dense slab -> (B, 1); tile-major flatten preserves order.
    return out.reshape(num_tiles * tb)[:B].reshape(B, 1)


def init_params(key, input_dim, neurons1, neurons2):
    """Deterministic init mimicking nn.Linear default (uniform +/- 1/sqrt(fan_in)).

    Weights are stored as (in_features, out_features) so the kernel computes
    x @ W + b directly.
    """
    ks = jax.random.split(key, 6)

    def linear(kw, kb, fan_in, fan_out):
        bound = 1.0 / jnp.sqrt(jnp.float32(fan_in))
        w = jax.random.uniform(kw, (fan_in, fan_out), jnp.float32, -bound, bound)
        b = jax.random.uniform(kb, (1, fan_out), jnp.float32, -bound, bound)
        return w, b

    w1, b1 = linear(ks[0], ks[1], input_dim, neurons1)
    w2, b2 = linear(ks[2], ks[3], neurons1, neurons2)
    w3, b3 = linear(ks[4], ks[5], neurons2, 1)
    return {"w1": w1, "b1": b1, "w2": w2, "b2": b2, "w3": w3, "b3": b3}


if __name__ == "__main__":
    key = jax.random.PRNGKey(0)
    kx, kp = jax.random.split(key)

    # Small shapes consistent with the module: batch=8, input_dim=32,
    # neurons1=64, neurons2=32 (dropout rate irrelevant in eval mode).
    B, input_dim, neurons1, neurons2 = 8, 32, 64, 32

    x = jax.random.normal(kx, (B, input_dim), jnp.float32)
    params = init_params(kp, input_dim, neurons1, neurons2)
    prepared = prepare_params(params)   # one-time bf16 weight cast / layout

    out = net2_forward(x, prepared)
    jax.block_until_ready(out)

    # Reference: emulate the kernel's bf16 matmul inputs with f32 accumulation.
    as_bf = lambda a: a.astype(jnp.bfloat16).astype(jnp.float32)
    h1 = jnp.maximum(as_bf(x) @ as_bf(params["w1"]) + params["b1"], 0.0)
    h2 = jnp.maximum(as_bf(h1) @ as_bf(params["w2"]) + params["b2"], 0.0)
    ref = h2 @ params["w3"] + params["b3"]

    assert out.shape == (B, 1)
    assert jnp.allclose(out, ref, atol=1e-3, rtol=1e-3), float(jnp.max(jnp.abs(out - ref)))

    print("KERNEL_OK")
</pallas_src>

<mosaic_0001>
module attributes {stable_mosaic.version = 11 : i64} {
  func.func @net2_kernel(%arg0: i32, %arg1: memref<128x32xf32, #tpu.memory_space<vmem>>, %arg2: memref<32x64xbf16, #tpu.memory_space<vmem>>, %arg3: memref<1x64xf32, #tpu.memory_space<vmem>>, %arg4: memref<64x32xbf16, #tpu.memory_space<vmem>>, %arg5: memref<1x32xf32, #tpu.memory_space<vmem>>, %arg6: memref<1x32xf32, #tpu.memory_space<vmem>>, %arg7: memref<1x1xf32, #tpu.memory_space<vmem>>, %arg8: memref<1x1x128xf32, #tpu.memory_space<vmem>>) attributes {dimension_semantics = [#tpu.dimension_semantics<parallel>], iteration_bounds = array<i64: 1>, scalar_prefetch = 0 : i64, scratch_operands = 0 : i64, tpu.core_type = #tpu.core_type<tc>, window_params = [{transform_indices = @transform_0, window_bounds = array<i64: 128, 32>}, {pipeline_mode = #tpu.pipeline_mode<synchronous>, transform_indices = @transform_1, window_bounds = array<i64: 32, 64>}, {pipeline_mode = #tpu.pipeline_mode<synchronous>, transform_indices = @transform_2, window_bounds = array<i64: 1, 64>}, {pipeline_mode = #tpu.pipeline_mode<synchronous>, transform_indices = @transform_3, window_bounds = array<i64: 64, 32>}, {pipeline_mode = #tpu.pipeline_mode<synchronous>, transform_indices = @transform_4, window_bounds = array<i64: 1, 32>}, {pipeline_mode = #tpu.pipeline_mode<synchronous>, transform_indices = @transform_5, window_bounds = array<i64: 1, 32>}, {pipeline_mode = #tpu.pipeline_mode<synchronous>, transform_indices = @transform_6, window_bounds = array<i64: 1, 1>}, {transform_indices = @transform_7, window_bounds = array<i64: 1, 1, 128>}]} {
    %c0 = arith.constant 0 : index
    %c0_0 = arith.constant 0 : index
    %0 = vector.load %arg1[%c0, %c0_0] : memref<128x32xf32, #tpu.memory_space<vmem>>, vector<128x32xf32>
    %1 = arith.truncf %0 : vector<128x32xf32> to vector<128x32xbf16>
    %c0_1 = arith.constant 0 : index
    %c0_2 = arith.constant 0 : index
    %2 = vector.load %arg2[%c0_1, %c0_2] : memref<32x64xbf16, #tpu.memory_space<vmem>>, vector<32x64xbf16>
    %cst = arith.constant dense<0.000000e+00> : vector<128x64xf32>
    %3 = tpu.matmul %1, %2, %cst {dimension_numbers = #tpu.dot_dimension_numbers<[1], [0], [0], [1], [0, 0, 1, 1], [], []>} : vector<128x32xbf16>, vector<32x64xbf16>, vector<128x64xf32> -> vector<128x64xf32>
    %c0_3 = arith.constant 0 : index
    %c0_4 = arith.constant 0 : index
    %4 = vector.load %arg3[%c0_3, %c0_4] : memref<1x64xf32, #tpu.memory_space<vmem>>, vector<1x64xf32>
    %5 = vector.broadcast %4 : vector<1x64xf32> to vector<128x64xf32>
    %6 = arith.addf %3, %5 : vector<128x64xf32>
    %cst_5 = arith.constant 0.000000e+00 : f32
    %7 = vector.broadcast %cst_5 : f32 to vector<128x64xf32>
    %8 = arith.maximumf %6, %7 : vector<128x64xf32>
    %9 = arith.truncf %8 : vector<128x64xf32> to vector<128x64xbf16>
    %c0_6 = arith.constant 0 : index
    %c0_7 = arith.constant 0 : index
    %10 = vector.load %arg4[%c0_6, %c0_7] : memref<64x32xbf16, #tpu.memory_space<vmem>>, vector<64x32xbf16>
    %cst_8 = arith.constant dense<0.000000e+00> : vector<128x32xf32>
    %11 = tpu.matmul %9, %10, %cst_8 {dimension_numbers = #tpu.dot_dimension_numbers<[1], [0], [0], [1], [0, 0, 1, 1], [], []>} : vector<128x64xbf16>, vector<64x32xbf16>, vector<128x32xf32> -> vector<128x32xf32>
    %c0_9 = arith.constant 0 : index
    %c0_10 = arith.constant 0 : index
    %12 = vector.load %arg5[%c0_9, %c0_10] : memref<1x32xf32, #tpu.memory_space<vmem>>, vector<1x32xf32>
    %13 = vector.broadcast %12 : vector<1x32xf32> to vector<128x32xf32>
    %14 = arith.addf %11, %13 : vector<128x32xf32>
    %cst_11 = arith.constant 0.000000e+00 : f32
    %15 = vector.broadcast %cst_11 : f32 to vector<128x32xf32>
    %16 = arith.maximumf %14, %15 : vector<128x32xf32>
    %c0_12 = arith.constant 0 : index
    %c0_13 = arith.constant 0 : index
    %17 = vector.load %arg6[%c0_12, %c0_13] : memref<1x32xf32, #tpu.memory_space<vmem>>, vector<1x32xf32>
    %18 = vector.broadcast %17 : vector<1x32xf32> to vector<128x32xf32>
    %19 = arith.mulf %16, %18 : vector<128x32xf32>
    %cst_14 = arith.constant dense<0.000000e+00> : vector<128xf32>
    %20 = vector.multi_reduction <add>, %19, %cst_14 [1] : vector<128x32xf32> to vector<128xf32>
    %21 = vector.shape_cast %20 : vector<128xf32> to vector<1x1x128xf32>
    %c0_15 = arith.constant 0 : index
    %c0_16 = arith.constant 0 : index
    %22 = vector.load %arg7[%c0_15, %c0_16] : memref<1x1xf32, #tpu.memory_space<vmem>>, vector<1x1xf32>
    %23 = vector.shape_cast %22 : vector<1x1xf32> to vector<1x1x1xf32>
    %24 = vector.broadcast %23 : vector<1x1x1xf32> to vector<1x1x128xf32>
    %25 = arith.addf %21, %24 : vector<1x1x128xf32>
    %c0_17 = arith.constant 0 : index
    %c0_18 = arith.constant 0 : index
    %c0_19 = arith.constant 0 : index
    %26 = vector.load %arg8[%c0_17, %c0_18, %c0_19] : memref<1x1x128xf32, #tpu.memory_space<vmem>>, vector<1x1x128xf32>
    tpu.vector_store %arg8[%c0_17, %c0_18, %c0_19], %25 {strides = array<i32>} : memref<1x1x128xf32, #tpu.memory_space<vmem>>, vector<1x1x128xf32>,
    return
  }
  func.func @transform_0(%arg0: i32) -> (i32, i32) {
    %c0_i32 = arith.constant 0 : i32
    %c0_i32_0 = arith.constant 0 : i32
    return %arg0, %c0_i32 : i32, i32
  }
  func.func @transform_1(%arg0: i32) -> (i32, i32) {
    %c0_i32 = arith.constant 0 : i32
    %c0_i32_0 = arith.constant 0 : i32
    %c0_i32_1 = arith.constant 0 : i32
    return %c0_i32, %c0_i32_0 : i32, i32
  }
  func.func @transform_2(%arg0: i32) -> (i32, i32) {
    %c0_i32 = arith.constant 0 : i32
    %c0_i32_0 = arith.constant 0 : i32
    %c0_i32_1 = arith.constant 0 : i32
    return %c0_i32, %c0_i32_0 : i32, i32
  }
  func.func @transform_3(%arg0: i32) -> (i32, i32) {
    %c0_i32 = arith.constant 0 : i32
    %c0_i32_0 = arith.constant 0 : i32
    %c0_i32_1 = arith.constant 0 : i32
    return %c0_i32, %c0_i32_0 : i32, i32
  }
  func.func @transform_4(%arg0: i32) -> (i32, i32) {
    %c0_i32 = arith.constant 0 : i32
    %c0_i32_0 = arith.constant 0 : i32
    %c0_i32_1 = arith.constant 0 : i32
    return %c0_i32, %c0_i32_0 : i32, i32
  }
  func.func @transform_5(%arg0: i32) -> (i32, i32) {
    %c0_i32 = arith.constant 0 : i32
    %c0_i32_0 = arith.constant 0 : i32
    %c0_i32_1 = arith.constant 0 : i32
    return %c0_i32, %c0_i32_0 : i32, i32
  }
  func.func @transform_6(%arg0: i32) -> (i32, i32) {
    %c0_i32 = arith.constant 0 : i32
    %c0_i32_0 = arith.constant 0 : i32
    %c0_i32_1 = arith.constant 0 : i32
    return %c0_i32, %c0_i32_0 : i32, i32
  }
  func.func @transform_7(%arg0: i32) -> (i32, i32, i32) {
    %c0_i32 = arith.constant 0 : i32
    %c0_i32_0 = arith.constant 0 : i32
    %c0_i32_1 = arith.constant 0 : i32
    return %arg0, %c0_i32, %c0_i32_0 : i32, i32, i32
  }
}

</mosaic_0001>

<bundles_post_ra>
// kernel: tpu_custom_call.1
= control target key start
LH: loop header
LB: loop body
LE: loop exit
PB: predicated region body
PF: predicated region fallthrough
CT: control target
= control target key end

     0   :  { %s1012_s0 = inlined_call_operand.vmem [shape: f32[128,32], index: 0, kind: input, shape index: {}]   ;;  %s1013_s1 = inlined_call_operand.vmem [shape: bf16[32,64], index: 1, kind: input, shape index: {}]   ;;  %s1014_s2 = inlined_call_operand.vmem [shape: f32[1,64], index: 2, kind: input, shape index: {}]   ;;  %s1015_s3 = inlined_call_operand.vmem [shape: bf16[64,32], index: 3, kind: input, shape index: {}]   ;;  %s1016_s4 = inlined_call_operand.vmem [shape: f32[1,32], index: 4, kind: input, shape index: {}]   ;;  %s1017_s5 = inlined_call_operand.vmem [shape: f32[1,32], index: 5, kind: input, shape index: {}]   ;;  %s1018_s6 = inlined_call_operand.<no memory space> [shape: f32[1,1], index: 6, kind: input, shape index: {}]   ;;  %s1019_s7 = inlined_call_operand.hbm [shape: f32[1,1,128], index: 7, kind: output, shape index: {}]  }
   0x1   :  { %v12_v0 = vstv %s1018_s6 }
   0x2   :  { %13 = vst [vmem:[#allocation2] sm:$0x1] %v12_v0 }
   0x3   :  { %v735_v1 = vld [vmem:[%s1013_s1 + $0x8] sm:$0xff]   ;;  %v736_v2 = vld [vmem:[%s1013_s1] sm:$0xff]   ;;  %vm77_vm0 = vcmask 261120   ;;  %v32_v6 = vld [vmem:[%s1012_s0 + $0x10] sm:$0xff] }
   0x4   :  { %687 = vmatprep.subr.bf16.mxu0 %v735_v1  ;;  %v30_v3 = vld [vmem:[%s1012_s0] sm:$0xff]  ;;  %v31_v4 = vld [vmem:[%s1012_s0 + $0x8] sm:$0xff]  ;;  %v33_v7 = vld [vmem:[%s1012_s0 + $0x18] sm:$0xff] }
   0x5   :  { %688 = vmatpush3.bf16.msra.mxu0 %v735_v1  ;;  %v46_v5 = vpack.c.bf16 %v31_v4, %v30_v3  ;;  %v34_v8 = vld [vmem:[%s1012_s0 + $0x20] sm:$0xff]  ;;  %v35_v9 = vld [vmem:[%s1012_s0 + $0x28] sm:$0xff]  ;;  %v47_v10 = vpack.c.bf16 %v33_v7, %v32_v6  ;;  %v737_v12 = vld [vmem:[%s1015_s3 + $0x18] sm:$0xff]  }
   0x6   :  { %689 = vmatprep.subr.bf16.mxu0 %v736_v2  ;;  %v48_v11 = vpack.c.bf16 %v35_v9, %v34_v8  ;;  %707 = vmatprep.subr.bf16.mxu1 %v737_v12 }
   0x7   :  { %691 = vmatprep.mubr.msk.bf16.mxu0 %vm77_vm0, %v46_v5 }
   0x9   :  { %690 = vmatpush3.bf16.msra.mxu0 %v736_v2 }
   0xc   :  { %692 = vmatmul.mubr.msk.bf16.vlgmr.msra.gmra.mxu0 %vm77_vm0, %v47_v10 }
   0xd   :  { %14 = vsyncpa [#allocation4], 0  ;;  %695 = vmatprep.mubr.msk.bf16.mxu0 %vm77_vm0, %v48_v11  ;;  %v36_v13 = vld [vmem:[%s1012_s0 + $0x30] sm:$0xff]  ;;  %v37_v14 = vld [vmem:[%s1012_s0 + $0x38] sm:$0xff]  ;;  %708 = vmatpush3.bf16.msra.mxu1 %v737_v12  ;;  %vm262_vm1 = vcmask 523264   ;;  %vm524_vm2 = vcmask 130112  }
   0xe   :  { %v38_v15 = vld [vmem:[%s1012_s0 + $0x40] sm:$0xff]  ;;  %v39_v16 = vld [vmem:[%s1012_s0 + $0x48] sm:$0xff]  ;;  %v49_v17 = vpack.c.bf16 %v37_v14, %v36_v13  ;;  %v40_v19 = vld [vmem:[%s1012_s0 + $0x50] sm:$0xff]  ;;  %vm531_vm3 = vcmask 195712   ;;  %vm538_vm4 = vcmask 261312   ;;  %vm545_vm5 = vcmask 326912  }
   0xf   :  { %v50_v18 = vpack.c.bf16 %v39_v16, %v38_v15  ;;  %v41_v20 = vld [vmem:[%s1012_s0 + $0x58] sm:$0xff]  ;;  %v42_v21 = vld [vmem:[%s1012_s0 + $0x60] sm:$0xff]  ;;  %v43_v22 = vld [vmem:[%s1012_s0 + $0x68] sm:$0xff]  ;;  %vm552_vm6 = vcmask 392512   ;;  %vm559_vm7 = vcmask 458112   ;;  %vm566_vm8 = vcmask 523712  }
  0x10   :  { %v51_v23 = vpack.c.bf16 %v41_v20, %v40_v19  ;;  %v52_v24 = vpack.c.bf16 %v43_v22, %v42_v21  ;;  %v44_v25 = vld [vmem:[%s1012_s0 + $0x70] sm:$0xff]  ;;  %v45_v26 = vld [vmem:[%s1012_s0 + $0x78] sm:$0xff]  ;;  %v739_v29 = vld [vmem:[%s1015_s3 + $0x8] sm:$0xff]   ;;  %vm573_vm9 = vcmask 589312   ;;  %vm580_vm10 = vcmask 654912  }
  0x11   :  { %v53_v27 = vpack.c.bf16 %v45_v26, %v44_v25  ;;  %v738_v28 = vld [vmem:[%s1015_s3 + $0x10] sm:$0xff]   ;;  %v740_v30 = vld [vmem:[%s1015_s3] sm:$0xff]   ;;  %vm587_vm11 = vcmask 720512   ;;  %vm594_vm12 = vcmask 786112   ;;  %vm601_vm13 = vcmask 851712  }
  0x12   :  { %709 = vmatprep.subr.bf16.mxu1 %v738_v28  ;;  %v640_v33 = vld [vmem:[%s1014_s2] ss:$0 sm:$0xff]  ;;  %vm608_vm14 = vcmask 917312   ;;  %vm615_vm15 = vcmask 982912  }
  0x13   :  { %710 = vmatpush3.bf16.msra.mxu1 %v738_v28  ;;  %v896_v25 = vld [vmem:[%s1016_s4] ss:$0 sm:$0xff]  ;;  %s764_s4 = smov [#allocation3]  }
  0x14   :  { %696 = vmatmul.mubr.msk.bf16.gmra.mxu0 %vm77_vm0, %v49_v17  ;;  %711 = vmatprep.subr.bf16.mxu1 %v739_v29 }
  0x15   :  { %699 = vmatprep.mubr.msk.bf16.mxu0 %vm77_vm0, %v50_v18 }
  0x17   :  { %712 = vmatpush3.bf16.msra.mxu1 %v739_v29  ;;  %v902_v29 = vld [vmem:[%s1017_s5] ss:$0 sm:$0xff]  ;;  %s632_s5 = sshll.u32 %s764_s4, 4  ;;  %s633_s5 = int_to_ptr.vmem [resolvable:$true] %s632_s5 }
  0x18   :  { %713 = vmatprep.subr.bf16.mxu1 %v740_v30  ;;  %s741_s23 = scalar_lea.vmem %s633_s5, 16  ;;  %s745_s24 = scalar_lea.vmem %s633_s5, 32 }
  0x19   :  { %p742_p0 = scmp.ne.s32.totalorder %s633_s5, %s741_s23  ;;  %p746_p1 = scmp.lt.s32.totalorder %s633_s5, %s633_s5 }
  0x1a   :  { %p747_p2 = scmp.lt.s32.totalorder %s745_s24, %s741_s23 }
  0x1b   :  { %714 = vmatpush3.bf16.msra.mxu1 %v740_v30 }
  0x1c   :  { %700 = vmatmul.mubr.msk.bf16.gmra.mxu0 %vm77_vm0, %v51_v23  ;;  %p748_p3 = por %p747_p2, %p746_p1 }
  0x1d   :  { %703 = vmatprep.mubr.msk.bf16.mxu0 %vm77_vm0, %v52_v24  ;;  %v763_v24 = vmov 0  }
  0x1e   :  { %733 = vset.pattern.permute.xlu1 %v763_v24  ;;  %734 = vset.pattern.permute.xlu0 %v763_v24  ;;  %p749_p4 = pnand %p748_p3, %p742_p0 }
  0x24   :  { %704 = vmatmul.mubr.msk.bf16.gmra.mxu0 %vm77_vm0, %v53_v27 }
  0xcc   :  { %v693_v31 = vpop.f32.mrf.mxu0 }
  0xcd   :  { %v145_v37 = vadd.f32 %v693_v31, %v640_v33 }
  0xce   :  { %v136_v32 = vpop.f32.mrf.mxu0 }
  0xcf   :  { %v137_v35 = vadd.f32 %v640_v33, %v136_v32  ;;  %v201_v44 = vmax.f32 %v145_v37, 0.0 }
  0xd0   :  { %v694_v34 = vpop.f32.mrf.mxu0 }
  0xd1   :  { %v148_v36 = vadd.f32 %v694_v34, %v640_v33  ;;  %v199_v42 = vmax.f32 %v137_v35, 0.0 }
  0xd2   :  { %v139_v38 = vpop.f32.mrf.mxu0 }
  0xd3   :  { %v140_v39 = vadd.f32 %v640_v33, %v139_v38  ;;  %v202_v40 = vmax.f32 %v148_v36, 0.0 }
  0xd4   :  { %v697_v41 = vpop.f32.mrf.mxu0 }
  0xd5   :  { %v200_v43 = vmax.f32 %v140_v39, 0.0  ;;  %v216_v47 = vpack.c.bf16 %v202_v40, %v201_v44  ;;  %v161_v51 = vadd.f32 %v697_v41, %v640_v33 }
  0xd6   :  { %v152_v45 = vpop.f32.mrf.mxu0 }
  0xd7   :  { %v215_v46 = vpack.c.bf16 %v200_v43, %v199_v42  ;;  %v153_v49 = vadd.f32 %v640_v33, %v152_v45  ;;  %v205_v58 = vmax.f32 %v161_v51, 0.0 }
  0xd8   :  { %v698_v48 = vpop.f32.mrf.mxu0 }
  0xd9   :  { %v164_v50 = vadd.f32 %v698_v48, %v640_v33  ;;  %715 = vmatprep.mubr.msk.bf16.mxu1 %vm262_vm1, %v215_v46  ;;  %v203_v56 = vmax.f32 %v153_v49, 0.0 }
  0xda   :  { %v155_v52 = vpop.f32.mrf.mxu0  ;;  %716 = vmatmul.mubr.msk.bf16.vlgmr.msra.gmra.mxu1 %vm262_vm1, %v216_v47 }
  0xdb   :  { %v156_v53 = vadd.f32 %v640_v33, %v155_v52  ;;  %v206_v54 = vmax.f32 %v164_v50, 0.0 }
  0xdc   :  { %v701_v55 = vpop.f32.mrf.mxu0 }
  0xdd   :  { %v204_v57 = vmax.f32 %v156_v53, 0.0  ;;  %v177_v59 = vadd.f32 %v701_v55, %v640_v33  ;;  %v218_v63 = vpack.c.bf16 %v206_v54, %v205_v58 }
  0xde   :  { %v168_v60 = vpop.f32.mrf.mxu0 }
  0xdf   :  { %v217_v61 = vpack.c.bf16 %v204_v57, %v203_v56  ;;  %v169_v62 = vadd.f32 %v640_v33, %v168_v60  ;;  %v209_v2 = vmax.f32 %v177_v59, 0.0 }
  0xe0   :  { %v702_v0 = vpop.f32.mrf.mxu0 }
  0xe1   :  { %719 = vmatprep.mubr.msk.bf16.mxu1 %vm262_vm1, %v217_v61  ;;  %v180_v1 = vadd.f32 %v702_v0, %v640_v33  ;;  %v207_v4 = vmax.f32 %v169_v62, 0.0 }
  0xe2   :  { %720 = vmatmul.mubr.msk.bf16.gmra.mxu1 %vm262_vm1, %v218_v63  ;;  %v171_v3 = vpop.f32.mrf.mxu0 }
  0xe3   :  { %v210_v5 = vmax.f32 %v180_v1, 0.0  ;;  %v172_v6 = vadd.f32 %v640_v33, %v171_v3 }
  0xe4   :  { %v705_v7 = vpop.f32.mrf.mxu0 }
  0xe5   :  { %v208_v8 = vmax.f32 %v172_v6, 0.0  ;;  %v220_v9 = vpack.c.bf16 %v210_v5, %v209_v2  ;;  %v193_v10 = vadd.f32 %v705_v7, %v640_v33 }
  0xe6   :  { %v184_v11 = vpop.f32.mrf.mxu0 }
  0xe7   :  { %v219_v12 = vpack.c.bf16 %v208_v8, %v207_v4  ;;  %v185_v13 = vadd.f32 %v640_v33, %v184_v11  ;;  %v213_v16 = vmax.f32 %v193_v10, 0.0 }
  0xe8   :  { %v706_v14 = vpop.f32.mrf.mxu0 }
  0xe9   :  { %723 = vmatprep.mubr.msk.bf16.mxu1 %vm262_vm1, %v219_v12  ;;  %v196_v15 = vadd.f32 %v706_v14, %v640_v33  ;;  %v211_v18 = vmax.f32 %v185_v13, 0.0 }
  0xea   :  { %724 = vmatmul.mubr.msk.bf16.gmra.mxu1 %vm262_vm1, %v220_v9  ;;  %v187_v17 = vpop.f32.mrf.mxu0 }
  0xeb   :  { %v214_v19 = vmax.f32 %v196_v15, 0.0  ;;  %v188_v20 = vadd.f32 %v640_v33, %v187_v17 }
  0xed   :  { %v212_v21 = vmax.f32 %v188_v20, 0.0  ;;  %v222_v22 = vpack.c.bf16 %v214_v19, %v213_v16 }
  0xef   :  { %v221_v23 = vpack.c.bf16 %v212_v21, %v211_v18 }
  0xf1   :  { %727 = vmatprep.mubr.msk.bf16.mxu1 %vm262_vm1, %v221_v23 }
  0xf2   :  { %728 = vmatmul.mubr.msk.bf16.gmra.mxu1 %vm262_vm1, %v222_v22 }
 0x19a   :  { %v717_v26 = vpop.f32.mrf.mxu1 }
 0x19b   :  { %v330_v27 = vadd.f32 %v717_v26, %v896_v25 }
 0x19c   :  { %v321_v28 = vpop.f32.mrf.mxu1 }
 0x19d   :  { %v386_v30 = vmax.f32 %v330_v27, 0.0  ;;  %v322_v31 = vadd.f32 %v896_v25, %v321_v28 }
 0x19e   :  { %v718_v32 = vpop.f32.mrf.mxu1 }
 0x19f   :  { %v384_v33 = vmax.f32 %v322_v31, 0.0  ;;  %v333_v34 = vadd.f32 %v718_v32, %v896_v25  ;;  %v409_v35 = vmul.f32 %v902_v29, %v386_v30 }
 0x1a0   :  { %v324_v36 = vpop.f32.mrf.mxu1 }
 0x1a1   :  { %v387_v37 = vmax.f32 %v333_v34, 0.0  ;;  %v325_v38 = vadd.f32 %v896_v25, %v324_v36  ;;  %v429_v39 = vsel %vm77_vm0, %v409_v35, 0.0  ;;  %v407_v40 = vmul.f32 %v902_v29, %v384_v33  ;;  %v471_v34 = vld [vmem:[#allocation2] sm:$0x1] }
 0x1a2   :  { %430 = vadd.xlane.f32.xlu1 %v429_v39  ;;  %v721_v41 = vpop.f32.mrf.mxu1 }
 0x1a3   :  { %v385_v42 = vmax.f32 %v325_v38, 0.0  ;;  %v346_v43 = vadd.f32 %v721_v41, %v896_v25  ;;  %v423_v44 = vsel %vm77_vm0, %v407_v40, 0.0  ;;  %v410_v45 = vmul.f32 %v902_v29, %v387_v37 }
 0x1a4   :  { %v337_v46 = vpop.f32.mrf.mxu1  ;;  %424 = vadd.xlane.f32.xlu0 %v423_v44 }
 0x1a5   :  { %v390_v47 = vmax.f32 %v346_v43, 0.0  ;;  %v338_v48 = vadd.f32 %v896_v25, %v337_v46  ;;  %v432_v49 = vsel %vm77_vm0, %v410_v45, 0.0  ;;  %v408_v50 = vmul.f32 %v902_v29, %v385_v42 }
 0x1a6   :  { %433 = vadd.xlane.f32.xlu1 %v432_v49  ;;  %v722_v51 = vpop.f32.mrf.mxu1 }
 0x1a7   :  { %v388_v52 = vmax.f32 %v338_v48, 0.0  ;;  %v349_v53 = vadd.f32 %v722_v51, %v896_v25  ;;  %v426_v54 = vsel %vm77_vm0, %v408_v50, 0.0  ;;  %v413_v55 = vmul.f32 %v902_v29, %v390_v47 }
 0x1a8   :  { %v340_v56 = vpop.f32.mrf.mxu1  ;;  %427 = vadd.xlane.f32.xlu0 %v426_v54  ;;  %v477_v51 = vlaneseq }
 0x1a9   :  { %v341_v57 = vadd.f32 %v896_v25, %v340_v56  ;;  %v391_v58 = vmax.f32 %v349_v53, 0.0  ;;  %v441_v61 = vsel %vm77_vm0, %v413_v55, 0.0  ;;  %v411_v63 = vmul.f32 %v902_v29, %v388_v52 }
 0x1aa   :  { %v725_v59 = vpop.f32.mrf.mxu1  ;;  %v951_v54 = vshrl.u32 %v477_v51, 7  ;;  %v954_v55 = vand.u32 127, %v477_v51 }
 0x1ab   :  { %v389_v60 = vmax.f32 %v341_v57, 0.0  ;;  %v362_v62 = vadd.f32 %v725_v59, %v896_v25  ;;  %v435_v6 = vsel %vm77_vm0, %v411_v63, 0.0  ;;  %v414_v7 = vmul.f32 %v902_v29, %v391_v58 }
 0x1ac   :  { %442 = vadd.xlane.f32.xlu0 %v441_v61  ;;  %v353_v0 = vpop.f32.mrf.mxu1  ;;  %v519_v59 = vadd.s32 4294967288, %v954_v55 }
 0x1ad   :  { %v394_v1 = vmax.f32 %v362_v62, 0.0  ;;  %v412_v2 = vmul.f32 %v902_v29, %v389_v60  ;;  %v354_v3 = vadd.f32 %v896_v25, %v353_v0  ;;  %v444_v15 = vsel %vm77_vm0, %v414_v7, 0.0 }
 0x1ae   :  { %v726_v4 = vpop.f32.mrf.mxu1  ;;  %v526_v60 = vadd.s32 4294967280, %v954_v55  ;;  %v517_v0 = vsub.s32 %v954_v55, %v951_v54 }
 0x1af   :  { %v438_v5 = vsel %vm77_vm0, %v412_v2, 0.0  ;;  %v365_v8 = vadd.f32 %v726_v4, %v896_v25  ;;  %v392_v10 = vmax.f32 %v354_v3, 0.0  ;;  %v417_v13 = vmul.f32 %v902_v29, %v394_v1 }
 0x1b0   :  { %439 = vadd.xlane.f32.xlu1 %v438_v5  ;;  %436 = vadd.xlane.f32.xlu0 %v435_v6  ;;  %v356_v9 = vpop.f32.mrf.mxu1  ;;  %v522_v1 = vsub.s32 %v519_v59, %v951_v54  ;;  %v529_v3 = vsub.s32 %v526_v60, %v951_v54  ;;  %v533_v6 = vadd.s32 4294967272, %v954_v55 }
 0x1b1   :  { %v395_v11 = vmax.f32 %v365_v8, 0.0  ;;  %v357_v12 = vadd.f32 %v896_v25, %v356_v9  ;;  %v453_v19 = vsel %vm77_vm0, %v417_v13, 0.0  ;;  %v415_v21 = vmul.f32 %v902_v29, %v392_v10 }
 0x1b2   :  { %v729_v14 = vpop.f32.mrf.mxu1  ;;  %v540_v9 = vadd.s32 4294967264, %v954_v55  ;;  %v547_v13 = vadd.s32 4294967256, %v954_v55 }
 0x1b3   :  { %v418_v16 = vmul.f32 %v902_v29, %v395_v11  ;;  %v393_v18 = vmax.f32 %v357_v12, 0.0  ;;  %v378_v20 = vadd.f32 %v729_v14, %v896_v25  ;;  %v447_v24 = vsel %vm77_vm0, %v415_v21, 0.0 }
 0x1b4   :  { %445 = vadd.xlane.f32.xlu0 %v444_v15  ;;  %v369_v17 = vpop.f32.mrf.mxu1  ;;  %v536_v12 = vsub.s32 %v533_v6, %v951_v54 }
 0x1b5   :  { %v398_v23 = vmax.f32 %v378_v20, 0.0  ;;  %v370_v26 = vadd.f32 %v896_v25, %v369_v17  ;;  %v416_v27 = vmul.f32 %v902_v29, %v393_v18 }
 0x1b6   :  { %v730_v22 = vpop.f32.mrf.mxu1 }
 0x1b7   :  { %v396_v30 = vmax.f32 %v370_v26, 0.0  ;;  %v450_v31 = vsel %vm77_vm0, %v416_v27, 0.0  ;;  %v421_v33 = vmul.f32 %v902_v29, %v398_v23  ;;  %v381_v35 = vadd.f32 %v730_v22, %v896_v25 }
 0x1b8   :  { %454 = vadd.xlane.f32.xlu0 %v453_v19  ;;  %v372_v28 = vpop.f32.mrf.mxu1  ;;  %v554_v19 = vadd.s32 4294967248, %v954_v55  ;;  %v550_v22 = vsub.s32 %v547_v13, %v951_v54  ;;  %v561_v26 = vadd.s32 4294967240, %v954_v55 }
 0x1b9   :  { %v373_v32 = vadd.f32 %v896_v25, %v372_v28  ;;  %v465_v37 = vsel %vm77_vm0, %v421_v33, 0.0  ;;  %v419_v38 = vmul.f32 %v902_v29, %v396_v30  ;;  %v399_v39 = vmax.f32 %v381_v35, 0.0 }
 0x1ba   :  { %v456_v25 = vsel %vm77_vm0, %v418_v16, 0.0  ;;  %v543_v16 = vsub.s32 %v540_v9, %v951_v54  ;;  %v568_v30 = vadd.s32 4294967232, %v954_v55  ;;  %v575_v33 = vadd.s32 4294967224, %v954_v55 }
 0x1bb   :  { %v397_v36 = vmax.f32 %v373_v32, 0.0  ;;  %v459_v40 = vsel %vm77_vm0, %v419_v38, 0.0  ;;  %v422_v43 = vmul.f32 %v902_v29, %v399_v39  ;;  %v564_v35 = vsub.s32 %v561_v26, %v951_v54 }
 0x1bc   :  { %448 = vadd.xlane.f32.xlu0 %v447_v24  ;;  %v557_v24 = vsub.s32 %v554_v19, %v951_v54  ;;  %v571_v38 = vsub.s32 %v568_v30, %v951_v54 }
 0x1bd   :  { %v420_v41 = vmul.f32 %v902_v29, %v397_v36  ;;  %v468_v44 = vsel %vm77_vm0, %v422_v43, 0.0  ;;  %v479_v29 = vsub.s32 0, %v951_v54  ;;  %v582_v43 = vadd.s32 4294967216, %v954_v55 }
 0x1bf   :  { %v462_v42 = vsel %vm77_vm0, %v420_v41, 0.0  ;;  %v585_v51 = vsub.s32 %v582_v43, %v951_v54  ;;  %vm622_vm0 = vcmask 1048512  }
 0x1c0   :  { %451 = vadd.xlane.f32.xlu0 %v450_v31 }
 0x1c1   :  { %474 = vperm.xlu1 %733, %v471_v34  }
 0x1c4   :  { %466 = vadd.xlane.f32.xlu0 %v465_v37 }
 0x1c8   :  { %460 = vadd.xlane.f32.xlu0 %v459_v40  ;;  %v578_v40 = vsub.s32 %v575_v33, %v951_v54 }
 0x1cc   :  { %463 = vadd.xlane.f32.xlu0 %v462_v42 }
 0x1d0   :  { %469 = vadd.xlane.f32.xlu0 %v468_v44 }
 0x1e5   :  { %457 = vadd.xlane.f32.xlu1 %v456_v25 }
 0x22b   :  { %v431_v48 = vpop.xlane.xlu1 %430 }
 0x22d   :  { %v425_v45 = vpop.xlane.xlu0 %424 }
 0x22f   :  { %v434_v50 = vpop.xlane.xlu1 %433 }
 0x231   :  { %v428_v46 = vpop.xlane.xlu0 %427 }
 0x235   :  { %v443_v47 = vpop.xlane.xlu0 %442 }
 0x239   :  { %v437_v49 = vpop.xlane.xlu0 %436  ;;  %v440_v52 = vpop.xlane.xlu1 %439 }
 0x23d   :  { %v446_v53 = vpop.xlane.xlu0 %445  ;;  %v475_v56 = vpop.permute.xlu1 %474 }
 0x23e   :  { %v958_v58 = vrot.slane %v475_v56, %v479_v29  ;;  %v617_v29 = vadd.s32 4294967176, %v954_v55 }
 0x240   :  { %v481_v62 = vadd.f32 %v958_v58, %v425_v45  ;;  %v482_v63 = vadd.f32 %v958_v58, %v428_v46  ;;  %v483_v2 = vadd.f32 %v958_v58, %v431_v48  ;;  %v484_v10 = vadd.f32 %v958_v58, %v434_v50 }
 0x241   :  { %v956_v57 = vpop.xlane.xlu0 %454  ;;  %v485_v14 = vadd.f32 %v958_v58, %v437_v49  ;;  %v486_v20 = vadd.f32 %v958_v58, %v440_v52  ;;  %v487_v27 = vadd.f32 %v958_v58, %v443_v47  ;;  %v488_v36 = vadd.f32 %v958_v58, %v446_v53 }
 0x242   :  { %v518_v4 = vrot.slane %v481_v62, %v517_v0  ;;  %v523_v5 = vrot.slane %v482_v63, %v522_v1  ;;  %v530_v8 = vrot.slane %v483_v2, %v529_v3  ;;  %v537_v18 = vrot.slane %v484_v10, %v536_v12 }
 0x243   :  { %v544_v23 = vrot.slane %v485_v14, %v543_v16  ;;  %v551_v32 = vrot.slane %v486_v20, %v550_v22  ;;  %v558_v37 = vrot.slane %v487_v27, %v557_v24  ;;  %v565_v25 = vrot.slane %v488_v36, %v564_v35 }
 0x244   :  { %v525_v11 = vsel %vm524_vm2, %v523_v5, %v518_v4  ;;  %v589_v45 = vadd.s32 4294967208, %v954_v55  ;;  %v596_v47 = vadd.s32 4294967200, %v954_v55  ;;  %v603_v50 = vadd.s32 4294967192, %v954_v55 }
 0x245   :  { %v449_v61 = vpop.xlane.xlu0 %448  ;;  %v532_v15 = vsel %vm531_vm3, %v530_v8, %v525_v11  ;;  %v491_v52 = vadd.f32 %v958_v58, %v956_v57  ;;  %v610_v53 = vadd.s32 4294967184, %v954_v55  ;;  %v620_v5 = vsub.s32 %v617_v29, %v951_v54 }
 0x246   :  { %v539_v21 = vsel %vm538_vm4, %v537_v18, %v532_v15  ;;  %v489_v39 = vadd.f32 %v958_v58, %v449_v61  ;;  %v592_v56 = vsub.s32 %v589_v45, %v951_v54  ;;  %v599_v60 = vsub.s32 %v596_v47, %v951_v54 }
 0x247   :  { %v546_v28 = vsel %vm545_vm5, %v544_v23, %v539_v21  ;;  %v606_v1 = vsub.s32 %v603_v50, %v951_v54  ;;  %v586_v3 = vrot.slane %v491_v52, %v585_v51  ;;  %v613_v55 = vsub.s32 %v610_v53, %v951_v54 }
 0x248   :  { %v553_v34 = vsel %vm552_vm6, %v551_v32, %v546_v28  ;;  %v572_v46 = vrot.slane %v489_v39, %v571_v38 }
 0x249   :  { %v452_v7 = vpop.xlane.xlu0 %451  ;;  %v560_v42 = vsel %vm559_vm7, %v558_v37, %v553_v34 }
 0x24a   :  { %v490_v41 = vadd.f32 %v958_v58, %v452_v7  ;;  %v567_v48 = vsel %vm566_vm8, %v565_v25, %v560_v42 }
 0x24b   :  { %v574_v59 = vsel %vm573_vm9, %v572_v46, %v567_v48 }
 0x24c   :  { %v579_v49 = vrot.slane %v490_v41, %v578_v40 }
 0x24d   :  { %v467_v17 = vpop.xlane.xlu0 %466 }
 0x24e   :  { %v581_v0 = vsel %vm580_vm10, %v579_v49, %v574_v59  ;;  %v495_v4 = vadd.f32 %v958_v58, %v467_v17 }
 0x24f   :  { %v588_v9 = vsel %vm587_vm11, %v586_v3, %v581_v0 }
 0x250   :  { %v614_v12 = vrot.slane %v495_v4, %v613_v55 }
 0x251   :  { %v461_v31 = vpop.xlane.xlu0 %460 }
 0x252   :  { %v493_v61 = vadd.f32 %v958_v58, %v461_v31 }
 0x254   :  { %v600_v8 = vrot.slane %v493_v61, %v599_v60 }
 0x255   :  { %v464_v44 = vpop.xlane.xlu0 %463 }
 0x256   :  { %v494_v57 = vadd.f32 %v958_v58, %v464_v44 }
 0x258   :  { %v607_v10 = vrot.slane %v494_v57, %v606_v1 }
 0x259   :  { %v470_v62 = vpop.xlane.xlu0 %469 }
 0x25a   :  { %v496_v6 = vadd.f32 %v958_v58, %v470_v62 }
 0x25c   :  { %v621_v14 = vrot.slane %v496_v6, %v620_v5 }
 0x26e   :  { %v458_v63 = vpop.xlane.xlu1 %457 }
 0x26f   :  { %v492_v2 = vadd.f32 %v958_v58, %v458_v63 }
 0x271   :  { %v593_v7 = vrot.slane %v492_v2, %v592_v56 }
 0x273   :  { %v595_v11 = vsel %vm594_vm12, %v593_v7, %v588_v9 }
 0x274   :  { %v602_v13 = vsel %vm601_vm13, %v600_v8, %v595_v11 }
 0x275   :  { %v609_v15 = vsel %vm608_vm14, %v607_v10, %v602_v13 }
 0x276   :  { %v616_v16 = vsel %vm615_vm15, %v614_v12, %v609_v15 }
 0x277   :  { %v623_v54 = vsel %vm622_vm0, %v621_v14, %v616_v16 }
 0x278   :  { %625 = vst [vmem:[#allocation3] sm:$0x1] %v623_v54 }
 0x279   :  { %752 = shalt.err (!%p749_p4)
}
 0x27a   :  { %635 = dma.vmem_to_hbm [thread:$0]  %s633_s5, 16, %s1019_s7, [#allocation4]  }
 0x27b   :  { %761 = dma.done.wait [#allocation4], 16  }
 0x27c   :  { %762 = vsyncadd [#allocation4], 4294967280 }
 0x27d   :  { %639 = vsyncpa [#allocation4], 1 }

</bundles_post_ra>
